<compile_context>
chip_gen: v5e
topology: v5e:2x2
jax: 0.10.0
libtpu: 0.0.40
codegen_flags: <defaults>
</compile_context>

<pallas_src>
import functools

import jax
import jax.numpy as jnp
from jax import lax
from jax.experimental import pallas as pl
from jax.experimental.pallas import tpu as pltpu


# ----------------------------- Pallas kernel --------------------------------

def _bottleneck_kernel(xa_ref, xsp_ref, wang_ref, wa2s_ref, wspa_ref,
                       out_ref, xa1_s, pad_s, *, h, w, cs, c, cout):
    """One (batch, pixel-shuffle-phase) grid step; everything stays in VMEM."""
    p = pl.program_id(1)                     # phase index (inner, 'arbitrary')
    ct = cs + c

    @pl.when(p == 0)
    def _per_batch_prologue():
        # Only the 1-wide border ring of the padded scratch must be zero (the
        # halo read by the 3x3 taps); the interior is fully rewritten every
        # phase, so zero borders once per batch instead of the whole buffer.
        zrow = jnp.zeros((1, w + 2, ct), pad_s.dtype)
        zcol = jnp.zeros((h + 2, 1, ct), pad_s.dtype)
        pad_s[0:1, :, :] = zrow
        pad_s[h + 1:h + 2, :, :] = zrow
        pad_s[:, 0:1, :] = zcol
        pad_s[:, w + 1:w + 2, :] = zcol

        # AngBottle: 1x1 conv == channel matmul on the MXU, then ReLU.  Cached
        # in VMEM for all angRes^2 phases of this batch.
        xa1 = jnp.einsum('hwc,cd->hwd', xa_ref[0], wang_ref[...],
                         preferred_element_type=jnp.float32)
        xa1_s[...] = jnp.maximum(xa1, 0.0).astype(xa1_s.dtype)

    # Ang2Spa restricted to THIS phase: one small matmul per phase instead of
    # a (rr, h, w, C) batched scratch (rr-times less VMEM, same total FLOPs).
    # PixelShuffle is absorbed into the phase-major weight permutation.
    up = jnp.einsum('hwc,cd->hwd', xa1_s[...], wa2s_ref[p],
                    preferred_element_type=jnp.float32)

    # torch.cat((xs, up), 1) is free in VMEM: two channel-range stores into a
    # single merged, zero-padded scratch, so each SpaBottle tap below is ONE
    # contraction over K = Cs + C (9 MXU pushes per phase instead of 18).
    pad_s[1:h + 1, 1:w + 1, 0:cs] = xsp_ref[0]
    pad_s[1:h + 1, 1:w + 1, cs:ct] = up.astype(pad_s.dtype)

    # SpaBottle: the dilated 3x3 conv restricted to this phase sub-grid is an
    # ordinary 3x3 conv with padding 1.  Nine MXU contractions share one f32
    # accumulator; ReLU fused into the single output store.
    # TODO(synk): for production h, w tile the rows (fori_loop over row chunks
    # or an extra grid axis) to bound the f32 accumulator's vreg footprint.
    acc = jnp.zeros((h, w, cout), jnp.float32)
    for ky in range(3):
        for kx in range(3):
            acc = acc + jnp.einsum('hwc,co->hwo',
                                   pad_s[ky:ky + h, kx:kx + w, :],
                                   wspa_ref[ky, kx],
                                   preferred_element_type=jnp.float32)
    # TODO(synk): fold w into the lane axis of the output block (lane-dense
    # (h, w*Cout) store) once the Mosaic reshape of the accumulator is
    # verified on the target toolchain; layout-only change, no compute.
    out_ref[0] = jnp.maximum(acc, 0.0).astype(out_ref.dtype)


# ------------------------------ VMEM budget ----------------------------------

def _vreg_padded_bytes(shape, dtype):
    """Conservative VMEM footprint of a buffer after (sublane, lane) padding."""
    itemsize = jnp.dtype(dtype).itemsize
    sublane = 8 * (4 // itemsize)                  # f32: 8, bf16: 16
    dims = (1, 1) + tuple(int(d) for d in shape)
    lead = 1
    for d in dims[:-2]:
        lead *= d
    second = -(-dims[-2] // sublane) * sublane
    minor = -(-dims[-1] // 128) * 128
    return lead * second * minor * itemsize


# ------------------------------- wrapper -------------------------------------

@functools.partial(jax.jit, static_argnames=("angRes", "compute_dtype"))
def bottleneck_forward(xa, xs, w_ang, w_a2s, w_spa, *, angRes,
                       compute_dtype=jnp.bfloat16):
    """Pallas-backed BottleNeck.forward.  xa/xs NCHW float32, weights OIHW."""
    r = int(angRes)
    B, Ca, h, w = xa.shape
    C = w_ang.shape[0]                       # channels
    Cs = xs.shape[1]                         # n_blocks * channels
    H, W = xs.shape[2], xs.shape[3]
    Cout = w_spa.shape[0]
    Ct = Cs + C
    assert H == h * r and W == w * r
    assert w_spa.shape[1] == Ct
    rr = r * r
    cdt = jnp.dtype(compute_dtype)

    # ---- layout plumbing: pure reshapes/transposes/casts, done once by XLA --
    xa_nhwc = xa.transpose(0, 2, 3, 1).astype(cdt)                      # (B,h,w,Ca)
    # xs in phase-major sub-grid layout:
    #   xsp[b*rr + i*r + j, yb, xb, c] = xs[b, c, yb*r + i, xb*r + j]
    xsp = (xs.reshape(B, Cs, h, r, w, r).transpose(0, 3, 5, 2, 4, 1)
             .reshape(B * rr, h, w, Cs).astype(cdt))
    w_ang_mat = w_ang[:, :, 0, 0].T.astype(cdt)                         # (Ca, C)
    # Ang2Spa weights permuted to phase-major output channels:
    #   w_a2s_phase[i*r + j, cin, c] = w_a2s[c*rr + i*r + j, cin]
    w_a2s_phase = (w_a2s[:, :, 0, 0].reshape(C, r, r, C)
                   .transpose(1, 2, 3, 0).reshape(rr, C, C).astype(cdt))
    # Combined SpaBottle weight (xs channels first, up channels last -> matches
    # the merged padded scratch layout, no concat anywhere).
    w_spa_t = w_spa.transpose(2, 3, 1, 0).astype(cdt)                   # (3,3,Ct,Cout)

    # ---- scoped-VMEM budget: scratches + double-buffered blocks + weights ---
    blocks = [((1, h, w, Ca), cdt), ((1, h, w, Cs), cdt),
              ((1, h, w, Cout), xs.dtype),
              ((Ca, C), cdt), ((rr, C, C), cdt), ((3, 3, Ct, Cout), cdt)]
    scratches = [((h, w, C), cdt), ((h + 2, w + 2, Ct), cdt)]
    footprint = (2 * sum(_vreg_padded_bytes(s, d) for s, d in blocks)
                 + sum(_vreg_padded_bytes(s, d) for s, d in scratches))
    try:
        vmem_cap = int(pltpu.get_tpu_info().vmem_capacity_bytes)
    except Exception:
        vmem_cap = 64 * 1024 * 1024            # v7x floor as a safe fallback
    vmem_limit = int(min(vmem_cap - 2 * 1024 * 1024,
                         max(32 * 1024 * 1024, 2 * footprint)))

    kernel = functools.partial(_bottleneck_kernel,
                               h=h, w=w, cs=Cs, c=C, cout=Cout)
    out_phase = pl.pallas_call(
        kernel,
        out_shape=jax.ShapeDtypeStruct((B * rr, h, w, Cout), xs.dtype),
        grid=(B, rr),
        in_specs=[
            pl.BlockSpec((1, h, w, Ca), lambda b, p: (b, 0, 0, 0)),
            pl.BlockSpec((1, h, w, Cs), lambda b, p: (b * rr + p, 0, 0, 0)),
            pl.BlockSpec((Ca, C), lambda b, p: (0, 0)),
            pl.BlockSpec((rr, C, C), lambda b, p: (0, 0, 0)),
            pl.BlockSpec((3, 3, Ct, Cout), lambda b, p: (0, 0, 0, 0)),
        ],
        out_specs=pl.BlockSpec((1, h, w, Cout),
                               lambda b, p: (b * rr + p, 0, 0, 0)),
        scratch_shapes=[
            pltpu.VMEM((h, w, C), cdt),            # xa1 cache (per batch)
            pltpu.VMEM((h + 2, w + 2, Ct), cdt),   # merged zero-padded xs|up
        ],
        compiler_params=pltpu.CompilerParams(
            dimension_semantics=("parallel", "arbitrary"),
            vmem_limit_bytes=vmem_limit),
    )(xa_nhwc, xsp, w_ang_mat, w_a2s_phase, w_spa_t)

    # Reassemble phases back to NCHW: out[b, co, yb*r+i, xb*r+j].
    # TODO(synk): keep surrounding LF_InterNet layers phase-major NHWC to drop
    # the wrapper-side HBM transposes entirely.
    out = out_phase.reshape(B, r, r, h, w, Cout).transpose(0, 5, 3, 1, 4, 2)
    return out.reshape(B, Cout, H, W)


# ------------------------------- reference -----------------------------------

def pixel_shuffle(x, r):
    """Exactly matches torch.nn.PixelShuffle. x: (B, C*r*r, h, w) NCHW."""
    B, C, h, w = x.shape
    c = C // (r * r)
    x = x.reshape(B, c, r, r, h, w)
    x = x.transpose(0, 1, 4, 2, 5, 3)
    return x.reshape(B, c, h * r, w * r)


def reference_forward(xa, xs, w_ang, w_a2s, w_spa, angRes):
    """Pure-JAX reference (lax convs) mirroring the PyTorch module."""
    dn = ('NCHW', 'OIHW', 'NCHW')
    d = angRes
    xa1 = jnp.maximum(
        lax.conv_general_dilated(xa, w_ang, (1, 1), 'VALID', dimension_numbers=dn), 0.0)
    xa2 = lax.conv_general_dilated(xa1, w_a2s, (1, 1), 'VALID', dimension_numbers=dn)
    up = pixel_shuffle(xa2, angRes)
    xs_cat = jnp.concatenate([xs, up], axis=1)
    out = lax.conv_general_dilated(
        xs_cat, w_spa, (1, 1), ((d, d), (d, d)),
        rhs_dilation=(d, d), dimension_numbers=dn)
    return jnp.maximum(out, 0.0)


# --------------------------------- main ---------------------------------------

if __name__ == "__main__":
    angRes, n_blocks, channels = 2, 2, 4
    B, h, w = 2, 8, 8
    H, W = h * angRes, w * angRes

    key = jax.random.PRNGKey(0)
    k1, k2, k3, k4, k5 = jax.random.split(key, 5)

    # inputs: xa lives on the angular grid (h, w); xs on the spatial grid (H, W)
    xa = jax.random.normal(k1, (B, n_blocks * channels, h, w), jnp.float32)
    xs = jax.random.normal(k2, (B, n_blocks * channels, H, W), jnp.float32)

    # deterministic synthetic weights (PyTorch OIHW shapes, no bias)
    w_ang = 0.1 * jax.random.normal(k3, (channels, n_blocks * channels, 1, 1), jnp.float32)
    w_a2s = 0.1 * jax.random.normal(k4, (angRes * angRes * channels, channels, 1, 1), jnp.float32)
    w_spa = 0.1 * jax.random.normal(k5, (channels, (n_blocks + 1) * channels, 3, 3), jnp.float32)

    ref = reference_forward(xa, xs, w_ang, w_a2s, w_spa, angRes)

    # f32 compute path: tight check against the lax reference.
    out_f32 = bottleneck_forward(xa, xs, w_ang, w_a2s, w_spa,
                                 angRes=angRes, compute_dtype=jnp.float32)
    out_f32 = jax.block_until_ready(out_f32)
    assert out_f32.shape == (B, channels, H, W), out_f32.shape
    err32 = float(jnp.max(jnp.abs(out_f32 - ref)))
    assert jnp.allclose(out_f32, ref, atol=1e-4, rtol=1e-4), f"f32 max abs err {err32}"

    # bf16 compute path (the perf default: bf16 MXU operands, f32 accumulation)
    # -- looser tolerance per the review note on bf16 operand rounding.
    out_bf16 = bottleneck_forward(xa, xs, w_ang, w_a2s, w_spa,
                                  angRes=angRes, compute_dtype=jnp.bfloat16)
    out_bf16 = jax.block_until_ready(out_bf16)
    assert out_bf16.shape == (B, channels, H, W), out_bf16.shape
    errbf = float(jnp.max(jnp.abs(out_bf16 - ref)))
    assert jnp.allclose(out_bf16, ref, atol=5e-2, rtol=5e-2), f"bf16 max abs err {errbf}"

    print("KERNEL_OK")
</pallas_src>

<mosaic_0001>
module attributes {stable_mosaic.version = 11 : i64} {
  func.func @_bottleneck_kernel(%arg0: i32, %arg1: i32, %arg2: memref<1x8x8x8xf32, #tpu.memory_space<vmem>>, %arg3: memref<1x8x8x8xf32, #tpu.memory_space<vmem>>, %arg4: memref<8x4xf32, #tpu.memory_space<vmem>>, %arg5: memref<4x4x4xf32, #tpu.memory_space<vmem>>, %arg6: memref<3x3x12x4xf32, #tpu.memory_space<vmem>>, %arg7: memref<1x8x8x4xf32, #tpu.memory_space<vmem>>, %arg8: memref<8x8x4xf32, #tpu.memory_space<vmem>>, %arg9: memref<10x10x12xf32, #tpu.memory_space<vmem>>) attributes {dimension_semantics = [#tpu.dimension_semantics<parallel>, #tpu.dimension_semantics<arbitrary>], iteration_bounds = array<i64: 2, 4>, scalar_prefetch = 0 : i64, scratch_operands = 2 : i64, tpu.core_type = #tpu.core_type<tc>, window_params = [{transform_indices = @transform_0, window_bounds = array<i64: 1, 8, 8, 8>}, {transform_indices = @transform_1, window_bounds = array<i64: 1, 8, 8, 8>}, {pipeline_mode = #tpu.pipeline_mode<synchronous>, transform_indices = @transform_2, window_bounds = array<i64: 8, 4>}, {pipeline_mode = #tpu.pipeline_mode<synchronous>, transform_indices = @transform_3, window_bounds = array<i64: 4, 4, 4>}, {pipeline_mode = #tpu.pipeline_mode<synchronous>, transform_indices = @transform_4, window_bounds = array<i64: 3, 3, 12, 4>}, {transform_indices = @transform_5, window_bounds = array<i64: 1, 8, 8, 4>}]} {
    %c0_i32 = arith.constant 0 : i32
    %0 = arith.cmpi eq, %arg1, %c0_i32 : i32
    %1 = arith.extui %0 : i1 to i32
    %c0_i32_0 = arith.constant 0 : i32
    %2 = arith.cmpi ne, %1, %c0_i32_0 : i32
    scf.if %2 {
      %cst_90 = arith.constant 0.000000e+00 : f32
      %63 = vector.broadcast %cst_90 : f32 to vector<1x10x12xf32>
      %cst_91 = arith.constant 0.000000e+00 : f32
      %64 = vector.broadcast %cst_91 : f32 to vector<10x1x12xf32>
      %c0_92 = arith.constant 0 : index
      %c0_93 = arith.constant 0 : index
      %c0_94 = arith.constant 0 : index
      %65 = vector.load %arg9[%c0_92, %c0_93, %c0_94] : memref<10x10x12xf32, #tpu.memory_space<vmem>>, vector<1x10x12xf32>
      tpu.vector_store %arg9[%c0_92, %c0_93, %c0_94], %63 {strides = array<i32>} : memref<10x10x12xf32, #tpu.memory_space<vmem>>, vector<1x10x12xf32>,
      %c9 = arith.constant 9 : index
      %c0_95 = arith.constant 0 : index
      %c0_96 = arith.constant 0 : index
      %66 = vector.load %arg9[%c9, %c0_95, %c0_96] : memref<10x10x12xf32, #tpu.memory_space<vmem>>, vector<1x10x12xf32>
      tpu.vector_store %arg9[%c9, %c0_95, %c0_96], %63 {strides = array<i32>} : memref<10x10x12xf32, #tpu.memory_space<vmem>>, vector<1x10x12xf32>,
      %c0_97 = arith.constant 0 : index
      %c0_98 = arith.constant 0 : index
      %c0_99 = arith.constant 0 : index
      %67 = vector.load %arg9[%c0_97, %c0_98, %c0_99] : memref<10x10x12xf32, #tpu.memory_space<vmem>>, vector<10x1x12xf32>
      tpu.vector_store %arg9[%c0_97, %c0_98, %c0_99], %64 {strides = array<i32>} : memref<10x10x12xf32, #tpu.memory_space<vmem>>, vector<10x1x12xf32>,
      %c0_100 = arith.constant 0 : index
      %c9_101 = arith.constant 9 : index
      %c0_102 = arith.constant 0 : index
      %68 = vector.load %arg9[%c0_100, %c9_101, %c0_102] : memref<10x10x12xf32, #tpu.memory_space<vmem>>, vector<10x1x12xf32>
      tpu.vector_store %arg9[%c0_100, %c9_101, %c0_102], %64 {strides = array<i32>} : memref<10x10x12xf32, #tpu.memory_space<vmem>>, vector<10x1x12xf32>,
      %c0_103 = arith.constant 0 : index
      %c0_104 = arith.constant 0 : index
      %c0_105 = arith.constant 0 : index
      %c0_106 = arith.constant 0 : index
      %69 = vector.load %arg2[%c0_103, %c0_104, %c0_105, %c0_106] : memref<1x8x8x8xf32, #tpu.memory_space<vmem>>, vector<1x8x8x8xf32>
      %70 = vector.shape_cast %69 : vector<1x8x8x8xf32> to vector<8x8x8xf32>
      %c0_107 = arith.constant 0 : index
      %c0_108 = arith.constant 0 : index
      %71 = vector.load %arg4[%c0_107, %c0_108] : memref<8x4xf32, #tpu.memory_space<vmem>>, vector<8x4xf32>
      "tpu.trace_start"() <{level = 10 : i32, message = "hwc,cd->hwd"}> : () -> ()
      %cst_109 = arith.constant dense<0.000000e+00> : vector<8x8x4xf32>
      %72 = tpu.matmul %70, %71, %cst_109 {dimension_numbers = #tpu.dot_dimension_numbers<[2], [0], [0, 1], [1], [0, 0, 0, 1, 1, 1], [], []>} : vector<8x8x8xf32>, vector<8x4xf32>, vector<8x8x4xf32> -> vector<8x8x4xf32>
      "tpu.trace_stop"() : () -> ()
      %cst_110 = arith.constant 0.000000e+00 : f32
      %73 = vector.broadcast %cst_110 : f32 to vector<8x8x4xf32>
      %74 = arith.maximumf %72, %73 : vector<8x8x4xf32>
      %c0_111 = arith.constant 0 : index
      %c0_112 = arith.constant 0 : index
      %c0_113 = arith.constant 0 : index
      %75 = vector.load %arg8[%c0_111, %c0_112, %c0_113] : memref<8x8x4xf32, #tpu.memory_space<vmem>>, vector<8x8x4xf32>
      tpu.vector_store %arg8[%c0_111, %c0_112, %c0_113], %74 {strides = array<i32>} : memref<8x8x4xf32, #tpu.memory_space<vmem>>, vector<8x8x4xf32>,
    } else {
    }
    %c0 = arith.constant 0 : index
    %c0_1 = arith.constant 0 : index
    %c0_2 = arith.constant 0 : index
    %3 = vector.load %arg8[%c0, %c0_1, %c0_2] : memref<8x8x4xf32, #tpu.memory_space<vmem>>, vector<8x8x4xf32>
    %4 = arith.index_cast %arg1 : i32 to index
    %c0_3 = arith.constant 0 : index
    %c0_4 = arith.constant 0 : index
    %5 = vector.load %arg5[%4, %c0_3, %c0_4] : memref<4x4x4xf32, #tpu.memory_space<vmem>>, vector<1x4x4xf32>
    %6 = vector.shape_cast %5 : vector<1x4x4xf32> to vector<4x4xf32>
    "tpu.trace_start"() <{level = 10 : i32, message = "hwc,cd->hwd"}> : () -> ()
    %cst = arith.constant dense<0.000000e+00> : vector<8x8x4xf32>
    %7 = tpu.matmul %3, %6, %cst {dimension_numbers = #tpu.dot_dimension_numbers<[2], [0], [0, 1], [1], [0, 0, 0, 1, 1, 1], [], []>} : vector<8x8x4xf32>, vector<4x4xf32>, vector<8x8x4xf32> -> vector<8x8x4xf32>
    "tpu.trace_stop"() : () -> ()
    %c0_5 = arith.constant 0 : index
    %c0_6 = arith.constant 0 : index
    %c0_7 = arith.constant 0 : index
    %c0_8 = arith.constant 0 : index
    %8 = vector.load %arg3[%c0_5, %c0_6, %c0_7, %c0_8] : memref<1x8x8x8xf32, #tpu.memory_space<vmem>>, vector<1x8x8x8xf32>
    %9 = vector.shape_cast %8 : vector<1x8x8x8xf32> to vector<8x8x8xf32>
    %c1 = arith.constant 1 : index
    %c1_9 = arith.constant 1 : index
    %c0_10 = arith.constant 0 : index
    %10 = vector.load %arg9[%c1, %c1_9, %c0_10] : memref<10x10x12xf32, #tpu.memory_space<vmem>>, vector<8x8x8xf32>
    tpu.vector_store %arg9[%c1, %c1_9, %c0_10], %9 {strides = array<i32>} : memref<10x10x12xf32, #tpu.memory_space<vmem>>, vector<8x8x8xf32>,
    %c1_11 = arith.constant 1 : index
    %c1_12 = arith.constant 1 : index
    %c8 = arith.constant 8 : index
    %11 = vector.load %arg9[%c1_11, %c1_12, %c8] : memref<10x10x12xf32, #tpu.memory_space<vmem>>, vector<8x8x4xf32>
    tpu.vector_store %arg9[%c1_11, %c1_12, %c8], %7 {strides = array<i32>} : memref<10x10x12xf32, #tpu.memory_space<vmem>>, vector<8x8x4xf32>,
    %cst_13 = arith.constant 0.000000e+00 : f32
    %12 = vector.broadcast %cst_13 : f32 to vector<8x8x4xf32>
    %c0_14 = arith.constant 0 : index
    %c0_15 = arith.constant 0 : index
    %c0_16 = arith.constant 0 : index
    %13 = vector.load %arg9[%c0_14, %c0_15, %c0_16] : memref<10x10x12xf32, #tpu.memory_space<vmem>>, vector<8x8x12xf32>
    %c0_17 = arith.constant 0 : index
    %c0_18 = arith.constant 0 : index
    %c0_19 = arith.constant 0 : index
    %c0_20 = arith.constant 0 : index
    %14 = vector.load %arg6[%c0_17, %c0_18, %c0_19, %c0_20] : memref<3x3x12x4xf32, #tpu.memory_space<vmem>>, vector<1x1x12x4xf32>
    %15 = vector.shape_cast %14 : vector<1x1x12x4xf32> to vector<12x4xf32>
    "tpu.trace_start"() <{level = 10 : i32, message = "hwc,co->hwo"}> : () -> ()
    %cst_21 = arith.constant dense<0.000000e+00> : vector<8x8x4xf32>
    %16 = tpu.matmul %13, %15, %cst_21 {dimension_numbers = #tpu.dot_dimension_numbers<[2], [0], [0, 1], [1], [0, 0, 0, 1, 1, 1], [], []>} : vector<8x8x12xf32>, vector<12x4xf32>, vector<8x8x4xf32> -> vector<8x8x4xf32>
    "tpu.trace_stop"() : () -> ()
    %17 = arith.addf %12, %16 : vector<8x8x4xf32>
    %c0_22 = arith.constant 0 : index
    %c1_23 = arith.constant 1 : index
    %c0_24 = arith.constant 0 : index
    %18 = vector.load %arg9[%c0_22, %c1_23, %c0_24] : memref<10x10x12xf32, #tpu.memory_space<vmem>>, vector<8x8x12xf32>
    %c0_25 = arith.constant 0 : index
    %c1_26 = arith.constant 1 : index
    %c0_27 = arith.constant 0 : index
    %c0_28 = arith.constant 0 : index
    %19 = vector.load %arg6[%c0_25, %c1_26, %c0_27, %c0_28] : memref<3x3x12x4xf32, #tpu.memory_space<vmem>>, vector<1x1x12x4xf32>
    %20 = vector.shape_cast %19 : vector<1x1x12x4xf32> to vector<12x4xf32>
    "tpu.trace_start"() <{level = 10 : i32, message = "hwc,co->hwo"}> : () -> ()
    %cst_29 = arith.constant dense<0.000000e+00> : vector<8x8x4xf32>
    %21 = tpu.matmul %18, %20, %cst_29 {dimension_numbers = #tpu.dot_dimension_numbers<[2], [0], [0, 1], [1], [0, 0, 0, 1, 1, 1], [], []>} : vector<8x8x12xf32>, vector<12x4xf32>, vector<8x8x4xf32> -> vector<8x8x4xf32>
    "tpu.trace_stop"() : () -> ()
    %22 = arith.addf %17, %21 : vector<8x8x4xf32>
    %c0_30 = arith.constant 0 : index
    %c2 = arith.constant 2 : index
    %c0_31 = arith.constant 0 : index
    %23 = vector.load %arg9[%c0_30, %c2, %c0_31] : memref<10x10x12xf32, #tpu.memory_space<vmem>>, vector<8x8x12xf32>
    %c0_32 = arith.constant 0 : index
    %c2_33 = arith.constant 2 : index
    %c0_34 = arith.constant 0 : index
    %c0_35 = arith.constant 0 : index
    %24 = vector.load %arg6[%c0_32, %c2_33, %c0_34, %c0_35] : memref<3x3x12x4xf32, #tpu.memory_space<vmem>>, vector<1x1x12x4xf32>
    %25 = vector.shape_cast %24 : vector<1x1x12x4xf32> to vector<12x4xf32>
    "tpu.trace_start"() <{level = 10 : i32, message = "hwc,co->hwo"}> : () -> ()
    %cst_36 = arith.constant dense<0.000000e+00> : vector<8x8x4xf32>
    %26 = tpu.matmul %23, %25, %cst_36 {dimension_numbers = #tpu.dot_dimension_numbers<[2], [0], [0, 1], [1], [0, 0, 0, 1, 1, 1], [], []>} : vector<8x8x12xf32>, vector<12x4xf32>, vector<8x8x4xf32> -> vector<8x8x4xf32>
    "tpu.trace_stop"() : () -> ()
    %27 = arith.addf %22, %26 : vector<8x8x4xf32>
    %c1_37 = arith.constant 1 : index
    %c0_38 = arith.constant 0 : index
    %c0_39 = arith.constant 0 : index
    %28 = vector.load %arg9[%c1_37, %c0_38, %c0_39] : memref<10x10x12xf32, #tpu.memory_space<vmem>>, vector<8x8x12xf32>
    %c1_40 = arith.constant 1 : index
    %c0_41 = arith.constant 0 : index
    %c0_42 = arith.constant 0 : index
    %c0_43 = arith.constant 0 : index
    %29 = vector.load %arg6[%c1_40, %c0_41, %c0_42, %c0_43] : memref<3x3x12x4xf32, #tpu.memory_space<vmem>>, vector<1x1x12x4xf32>
    %30 = vector.shape_cast %29 : vector<1x1x12x4xf32> to vector<12x4xf32>
    "tpu.trace_start"() <{level = 10 : i32, message = "hwc,co->hwo"}> : () -> ()
    %cst_44 = arith.constant dense<0.000000e+00> : vector<8x8x4xf32>
    %31 = tpu.matmul %28, %30, %cst_44 {dimension_numbers = #tpu.dot_dimension_numbers<[2], [0], [0, 1], [1], [0, 0, 0, 1, 1, 1], [], []>} : vector<8x8x12xf32>, vector<12x4xf32>, vector<8x8x4xf32> -> vector<8x8x4xf32>
    "tpu.trace_stop"() : () -> ()
    %32 = arith.addf %27, %31 : vector<8x8x4xf32>
    %c1_45 = arith.constant 1 : index
    %c1_46 = arith.constant 1 : index
    %c0_47 = arith.constant 0 : index
    %33 = vector.load %arg9[%c1_45, %c1_46, %c0_47] : memref<10x10x12xf32, #tpu.memory_space<vmem>>, vector<8x8x12xf32>
    %c1_48 = arith.constant 1 : index
    %c1_49 = arith.constant 1 : index
    %c0_50 = arith.constant 0 : index
    %c0_51 = arith.constant 0 : index
    %34 = vector.load %arg6[%c1_48, %c1_49, %c0_50, %c0_51] : memref<3x3x12x4xf32, #tpu.memory_space<vmem>>, vector<1x1x12x4xf32>
    %35 = vector.shape_cast %34 : vector<1x1x12x4xf32> to vector<12x4xf32>
    "tpu.trace_start"() <{level = 10 : i32, message = "hwc,co->hwo"}> : () -> ()
    %cst_52 = arith.constant dense<0.000000e+00> : vector<8x8x4xf32>
    %36 = tpu.matmul %33, %35, %cst_52 {dimension_numbers = #tpu.dot_dimension_numbers<[2], [0], [0, 1], [1], [0, 0, 0, 1, 1, 1], [], []>} : vector<8x8x12xf32>, vector<12x4xf32>, vector<8x8x4xf32> -> vector<8x8x4xf32>
    "tpu.trace_stop"() : () -> ()
    %37 = arith.addf %32, %36 : vector<8x8x4xf32>
    %c1_53 = arith.constant 1 : index
    %c2_54 = arith.constant 2 : index
    %c0_55 = arith.constant 0 : index
    %38 = vector.load %arg9[%c1_53, %c2_54, %c0_55] : memref<10x10x12xf32, #tpu.memory_space<vmem>>, vector<8x8x12xf32>
    %c1_56 = arith.constant 1 : index
    %c2_57 = arith.constant 2 : index
    %c0_58 = arith.constant 0 : index
    %c0_59 = arith.constant 0 : index
    %39 = vector.load %arg6[%c1_56, %c2_57, %c0_58, %c0_59] : memref<3x3x12x4xf32, #tpu.memory_space<vmem>>, vector<1x1x12x4xf32>
    %40 = vector.shape_cast %39 : vector<1x1x12x4xf32> to vector<12x4xf32>
    "tpu.trace_start"() <{level = 10 : i32, message = "hwc,co->hwo"}> : () -> ()
    %cst_60 = arith.constant dense<0.000000e+00> : vector<8x8x4xf32>
    %41 = tpu.matmul %38, %40, %cst_60 {dimension_numbers = #tpu.dot_dimension_numbers<[2], [0], [0, 1], [1], [0, 0, 0, 1, 1, 1], [], []>} : vector<8x8x12xf32>, vector<12x4xf32>, vector<8x8x4xf32> -> vector<8x8x4xf32>
    "tpu.trace_stop"() : () -> ()
    %42 = arith.addf %37, %41 : vector<8x8x4xf32>
    %c2_61 = arith.constant 2 : index
    %c0_62 = arith.constant 0 : index
    %c0_63 = arith.constant 0 : index
    %43 = vector.load %arg9[%c2_61, %c0_62, %c0_63] : memref<10x10x12xf32, #tpu.memory_space<vmem>>, vector<8x8x12xf32>
    %c2_64 = arith.constant 2 : index
    %c0_65 = arith.constant 0 : index
    %c0_66 = arith.constant 0 : index
    %c0_67 = arith.constant 0 : index
    %44 = vector.load %arg6[%c2_64, %c0_65, %c0_66, %c0_67] : memref<3x3x12x4xf32, #tpu.memory_space<vmem>>, vector<1x1x12x4xf32>
    %45 = vector.shape_cast %44 : vector<1x1x12x4xf32> to vector<12x4xf32>
    "tpu.trace_start"() <{level = 10 : i32, message = "hwc,co->hwo"}> : () -> ()
    %cst_68 = arith.constant dense<0.000000e+00> : vector<8x8x4xf32>
    %46 = tpu.matmul %43, %45, %cst_68 {dimension_numbers = #tpu.dot_dimension_numbers<[2], [0], [0, 1], [1], [0, 0, 0, 1, 1, 1], [], []>} : vector<8x8x12xf32>, vector<12x4xf32>, vector<8x8x4xf32> -> vector<8x8x4xf32>
    "tpu.trace_stop"() : () -> ()
    %47 = arith.addf %42, %46 : vector<8x8x4xf32>
    %c2_69 = arith.constant 2 : index
    %c1_70 = arith.constant 1 : index
    %c0_71 = arith.constant 0 : index
    %48 = vector.load %arg9[%c2_69, %c1_70, %c0_71] : memref<10x10x12xf32, #tpu.memory_space<vmem>>, vector<8x8x12xf32>
    %c2_72 = arith.constant 2 : index
    %c1_73 = arith.constant 1 : index
    %c0_74 = arith.constant 0 : index
    %c0_75 = arith.constant 0 : index
    %49 = vector.load %arg6[%c2_72, %c1_73, %c0_74, %c0_75] : memref<3x3x12x4xf32, #tpu.memory_space<vmem>>, vector<1x1x12x4xf32>
    %50 = vector.shape_cast %49 : vector<1x1x12x4xf32> to vector<12x4xf32>
    "tpu.trace_start"() <{level = 10 : i32, message = "hwc,co->hwo"}> : () -> ()
    %cst_76 = arith.constant dense<0.000000e+00> : vector<8x8x4xf32>
    %51 = tpu.matmul %48, %50, %cst_76 {dimension_numbers = #tpu.dot_dimension_numbers<[2], [0], [0, 1], [1], [0, 0, 0, 1, 1, 1], [], []>} : vector<8x8x12xf32>, vector<12x4xf32>, vector<8x8x4xf32> -> vector<8x8x4xf32>
    "tpu.trace_stop"() : () -> ()
    %52 = arith.addf %47, %51 : vector<8x8x4xf32>
    %c2_77 = arith.constant 2 : index
    %c2_78 = arith.constant 2 : index
    %c0_79 = arith.constant 0 : index
    %53 = vector.load %arg9[%c2_77, %c2_78, %c0_79] : memref<10x10x12xf32, #tpu.memory_space<vmem>>, vector<8x8x12xf32>
    %c2_80 = arith.constant 2 : index
    %c2_81 = arith.constant 2 : index
    %c0_82 = arith.constant 0 : index
    %c0_83 = arith.constant 0 : index
    %54 = vector.load %arg6[%c2_80, %c2_81, %c0_82, %c0_83] : memref<3x3x12x4xf32, #tpu.memory_space<vmem>>, vector<1x1x12x4xf32>
    %55 = vector.shape_cast %54 : vector<1x1x12x4xf32> to vector<12x4xf32>
    "tpu.trace_start"() <{level = 10 : i32, message = "hwc,co->hwo"}> : () -> ()
    %cst_84 = arith.constant dense<0.000000e+00> : vector<8x8x4xf32>
    %56 = tpu.matmul %53, %55, %cst_84 {dimension_numbers = #tpu.dot_dimension_numbers<[2], [0], [0, 1], [1], [0, 0, 0, 1, 1, 1], [], []>} : vector<8x8x12xf32>, vector<12x4xf32>, vector<8x8x4xf32> -> vector<8x8x4xf32>
    "tpu.trace_stop"() : () -> ()
    %57 = arith.addf %52, %56 : vector<8x8x4xf32>
    %cst_85 = arith.constant 0.000000e+00 : f32
    %58 = vector.broadcast %cst_85 : f32 to vector<8x8x4xf32>
    %59 = arith.maximumf %57, %58 : vector<8x8x4xf32>
    %c0_86 = arith.constant 0 : index
    %c0_87 = arith.constant 0 : index
    %c0_88 = arith.constant 0 : index
    %c0_89 = arith.constant 0 : index
    %60 = vector.load %arg7[%c0_86, %c0_87, %c0_88, %c0_89] : memref<1x8x8x4xf32, #tpu.memory_space<vmem>>, vector<1x8x8x4xf32>
    %61 = vector.shape_cast %60 : vector<1x8x8x4xf32> to vector<8x8x4xf32>
    %62 = vector.shape_cast %59 : vector<8x8x4xf32> to vector<1x8x8x4xf32>
    tpu.vector_store %arg7[%c0_86, %c0_87, %c0_88, %c0_89], %62 {strides = array<i32>} : memref<1x8x8x4xf32, #tpu.memory_space<vmem>>, vector<1x8x8x4xf32>,
    return
  }
  func.func @transform_0(%arg0: i32, %arg1: i32) -> (i32, i32, i32, i32) {
    %c0_i32 = arith.constant 0 : i32
    %c0_i32_0 = arith.constant 0 : i32
    %c0_i32_1 = arith.constant 0 : i32
    %c0_i32_2 = arith.constant 0 : i32
    return %arg0, %c0_i32, %c0_i32_0, %c0_i32_1 : i32, i32, i32, i32
  }
  func.func @transform_1(%arg0: i32, %arg1: i32) -> (i32, i32, i32, i32) {
    %c4_i32 = arith.constant 4 : i32
    %0 = arith.muli %arg0, %c4_i32 : i32
    %1 = arith.addi %0, %arg1 : i32
    %c0_i32 = arith.constant 0 : i32
    %c0_i32_0 = arith.constant 0 : i32
    %c0_i32_1 = arith.constant 0 : i32
    %c0_i32_2 = arith.constant 0 : i32
    return %1, %c0_i32, %c0_i32_0, %c0_i32_1 : i32, i32, i32, i32
  }
  func.func @transform_2(%arg0: i32, %arg1: i32) -> (i32, i32) {
    %c0_i32 = arith.constant 0 : i32
    %c0_i32_0 = arith.constant 0 : i32
    %c0_i32_1 = arith.constant 0 : i32
    return %c0_i32, %c0_i32_0 : i32, i32
  }
  func.func @transform_3(%arg0: i32, %arg1: i32) -> (i32, i32, i32) {
    %c0_i32 = arith.constant 0 : i32
    %c0_i32_0 = arith.constant 0 : i32
    %c0_i32_1 = arith.constant 0 : i32
    %c0_i32_2 = arith.constant 0 : i32
    return %c0_i32, %c0_i32_0, %c0_i32_1 : i32, i32, i32
  }
  func.func @transform_4(%arg0: i32, %arg1: i32) -> (i32, i32, i32, i32) {
    %c0_i32 = arith.constant 0 : i32
    %c0_i32_0 = arith.constant 0 : i32
    %c0_i32_1 = arith.constant 0 : i32
    %c0_i32_2 = arith.constant 0 : i32
    %c0_i32_3 = arith.constant 0 : i32
    return %c0_i32, %c0_i32_0, %c0_i32_1, %c0_i32_2 : i32, i32, i32, i32
  }
  func.func @transform_5(%arg0: i32, %arg1: i32) -> (i32, i32, i32, i32) {
    %c4_i32 = arith.constant 4 : i32
    %0 = arith.muli %arg0, %c4_i32 : i32
    %1 = arith.addi %0, %arg1 : i32
    %c0_i32 = arith.constant 0 : i32
    %c0_i32_0 = arith.constant 0 : i32
    %c0_i32_1 = arith.constant 0 : i32
    %c0_i32_2 = arith.constant 0 : i32
    return %1, %c0_i32, %c0_i32_0, %c0_i32_1 : i32, i32, i32, i32
  }
}

</mosaic_0001>

<bundles_post_ra>
// kernel: bottleneck_forward.1
= control target key start
LH: loop header
LB: loop body
LE: loop exit
PB: predicated region body
PF: predicated region fallthrough
CT: control target
= control target key end

     0   :  { %s1674_s18 = smov 0   ;;  %s1676_s19 = smov 0   ;;  %s2082_s0 = inlined_call_operand.vmem [shape: f32[2,8,8,8], index: 0, kind: input, shape index: {}]   ;;  %s2083_s1 = inlined_call_operand.vmem [shape: f32[8,8,8,8], index: 1, kind: input, shape index: {}]   ;;  %s2084_s2 = inlined_call_operand.vmem [shape: f32[8,4], index: 2, kind: input, shape index: {}]   ;;  %s2085_s3 = inlined_call_operand.vmem [shape: f32[4,4,4], index: 3, kind: input, shape index: {}]   ;;  %s2086_s4 = inlined_call_operand.vmem [shape: f32[3,3,12,4], index: 4, kind: input, shape index: {}]   ;;  %s2087_s5 = inlined_call_operand.vmem [shape: f32[8,8,8,4], index: 5, kind: output, shape index: {}]  }
   0x1   :  { %s1678_s20 = smov 0   ;;  %s1680_s21 = smov 0  }
   0x2   :  { %s1682_s22 = smov 0  }
   0x3 LB: > { %s24_s23 = sadd.s32 1, %s1632_s20  ;;  %s27_s24 = sadd.s32 1, %s1636_s21  ;;  %s1640_s22 = sphi %s1682_s22, %s15_s22   ;;  %s1636_s21 = sphi %s1680_s21, %s2091_s21   ;;  %s1632_s20 = sphi %s1678_s20, %s2090_s20   ;;  %s1628_s19 = sphi %s1676_s19, %s2089_s19   ;;  %s1624_s18 = sphi %s1674_s18, %s2088_s18  }
   0x4   : > { %p25_p0 = scmp.ge.s32.totalorder %s24_s23, 4  ;;  %p1424_p1 = scmp.ge.s32.totalorder %s1640_s22, 1 }
   0x5   : > { %p221_p2 = scmp.lt.s32.totalorder %s1640_s22, 9 }
   0x6   : > { %s2093_s23 = smov (%p25_p0, %s24_s23), 0  ;;  %s2095_s24 = smov (!%p25_p0, %s27_s24), %s1636_s21 }
   0x7   : > { %p222_p3 = pnand %p1424_p1, %p221_p2  ;;  %p29_p4 = scmp.ge.s32.totalorder %s2095_s24, 2 }
   0x8   : > { %p258_p5 = scmp.lt.s32.totalorder (!%p222_p3), %s1628_s19, 1  ;;  %s1427_s25 = sshll.u32 (!%p222_p3), %s1628_s19, 2 }
   0x9   : > { %s2097_s24 = smov (%p29_p4, %s2095_s24), 0  ;;  %225 = sbr.rel (%p222_p3) target bundleno = 741 (0x2e5), region = 40 }
   0xa   : > { %s264_s26 = sadd.s32 (!%p222_p3), %s1624_s18, %s1427_s25  ;;  %p1433_p7 = scmp.ne.s32.totalorder (!%p222_p3), %s1624_s18, 0 }
   0xb   : > { %p265_p6 = scmp.lt.s32.totalorder (!%p222_p3), %s264_s26, 7 }
   0xe   : > { %s2099_s19 = smov (!%p258_p5, %s1628_s19), 1  ;;  %s2101_s26 = smov (!%p265_p6, %s264_s26), 7 }
   0xf   : > { %s1551_s27 = sshll.u32 %s2099_s19, 6  ;;  %s1552_s6 = sshll.u32 %s2101_s26, 6 }
  0x10   : > { %s1710_s30 = scalar_lea.vmem %s2082_s0, %s1551_s27  ;;  %s1715_s9 = scalar_lea.vmem %s2083_s1, %s1552_s6 }
  0x11   : > { %s1720_s12 = scalar_lea.vmem %s2087_s5, %s1552_s6  ;;  %284 = sbr.rel (%p1433_p7) target bundleno = 168 (0xa8), region = 44 }
  0x16   : > { %v321_v0 = vld [vmem:[%s2084_s2] sm:$0xff]  ;;  %vm322_vm0 = vcmask 64512   ;;  %v319_v2 = vld [vmem:[%s1710_s30 + $0x30] sm:$0xff]  ;;  %vm285_vm1 = vcmask 97280   ;;  %v1642_v3 = vmov 0.0   ;;  %vm287_vm2 = vcmask 91136  }
  0x17   : > { %v317_v1 = vld [vmem:[%s1710_s30 + $0x20] sm:$0xff]  ;;  %1555 = vmatpush.msra.mxu2 %v321_v0  ;;  %1556 = vmatpush.msra.mxu3 %v321_v0  ;;  %286 = vst.msk [vmem:[#allocation3] sm:$0xff] %vm285_vm1, %v1642_v3  ;;  %v315_v5 = vld [vmem:[%s1710_s30 + $0x10] sm:$0xff]  ;;  %vm292_vm3 = vcmask 90112   ;;  %v318_v6 = vld [vmem:[%s1710_s30 + $0x28] sm:$0xff]  ;;  %vm396_vm4 = vcmask 31744  }
  0x18   : > { %v313_v4 = vld [vmem:[%s1710_s30] sm:$0xff]  ;;  %1438 = vmatmul.msk.f32.vlgmr.msra.gmra.mxu2 %vm322_vm0, %v317_v1  ;;  %1440 = vmatmul.msk.f32.vlgmr.msra.gmra.mxu3 %vm322_vm0, %v319_v2  ;;  %288 = vst.msk [vmem:[#allocation3 + $0x8] sm:$0x3] %vm287_vm2, %v1642_v3  ;;  %v320_v7 = vld [vmem:[%s1710_s30 + $0x38] sm:$0xff]  ;;  %v314_v8 = vld [vmem:[%s1710_s30 + $0x8] sm:$0xff] }
  0x19   : > { %290 = vst.msk [vmem:[#allocation3 + $0x90] sm:$0xff] %vm285_vm1, %v1642_v3  ;;  %362 = vmatpush.msra.mxu0 %v321_v0  ;;  %1554 = vmatpush.msra.mxu1 %v321_v0  ;;  %v316_v9 = vld [vmem:[%s1710_s30 + $0x18] sm:$0xff] }
  0x1a   : > { %291 = vst.msk [vmem:[#allocation3 + $0x98] sm:$0x3] %vm287_vm2, %v1642_v3  ;;  %1434 = vmatmul.msk.f32.vlgmr.msra.gmra.mxu0 %vm322_vm0, %v313_v4  ;;  %1436 = vmatmul.msk.f32.vlgmr.msra.gmra.mxu1 %vm322_vm0, %v315_v5 }
  0x1b   : > { %293 = vst.msk [vmem:[#allocation3] sm:$0x1] %vm292_vm3, %v1642_v3 }
  0x1c   : > { %294 = vst.msk [vmem:[#allocation3 + $0x10] sm:$0x1] %vm292_vm3, %v1642_v3 }
  0x1d   : > { %295 = vst.msk [vmem:[#allocation3 + $0x20] sm:$0x1] %vm292_vm3, %v1642_v3 }
  0x1e   : > { %296 = vst.msk [vmem:[#allocation3 + $0x30] sm:$0x1] %vm292_vm3, %v1642_v3 }
  0x1f   : > { %297 = vst.msk [vmem:[#allocation3 + $0x40] sm:$0x1] %vm292_vm3, %v1642_v3 }
  0x20   : > { %298 = vst.msk [vmem:[#allocation3 + $0x50] sm:$0x1] %vm292_vm3, %v1642_v3  ;;  %1439 = vmatmul.msk.f32.gmra.mxu2 %vm322_vm0, %v318_v6  ;;  %1441 = vmatmul.msk.f32.gmra.mxu3 %vm322_vm0, %v320_v7 }
  0x21   : > { %299 = vst.msk [vmem:[#allocation3 + $0x60] sm:$0x1] %vm292_vm3, %v1642_v3 }
  0x22   : > { %300 = vst.msk [vmem:[#allocation3 + $0x70] sm:$0x1] %vm292_vm3, %v1642_v3  ;;  %1435 = vmatmul.msk.f32.gmra.mxu0 %vm322_vm0, %v314_v8  ;;  %1437 = vmatmul.msk.f32.gmra.mxu1 %vm322_vm0, %v316_v9 }
  0x23   : > { %301 = vst.msk [vmem:[#allocation3 + $0x80] sm:$0x1] %vm292_vm3, %v1642_v3 }
  0x24   : > { %302 = vst.msk [vmem:[#allocation3 + $0x90] sm:$0x1] %vm292_vm3, %v1642_v3 }
  0x25   : > { %303 = vst.msk [vmem:[#allocation3 + $0x9] sm:$0x1] %vm292_vm3, %v1642_v3 }
  0x26   : > { %304 = vst.msk [vmem:[#allocation3 + $0x19] sm:$0x1] %vm292_vm3, %v1642_v3 }
  0x27   : > { %305 = vst.msk [vmem:[#allocation3 + $0x29] sm:$0x1] %vm292_vm3, %v1642_v3 }
  0x28   : > { %306 = vst.msk [vmem:[#allocation3 + $0x39] sm:$0x1] %vm292_vm3, %v1642_v3 }
  0x29   : > { %307 = vst.msk [vmem:[#allocation3 + $0x49] sm:$0x1] %vm292_vm3, %v1642_v3 }
  0x2a   : > { %308 = vst.msk [vmem:[#allocation3 + $0x59] sm:$0x1] %vm292_vm3, %v1642_v3 }
  0x2b   : > { %309 = vst.msk [vmem:[#allocation3 + $0x69] sm:$0x1] %vm292_vm3, %v1642_v3 }
  0x2c   : > { %310 = vst.msk [vmem:[#allocation3 + $0x79] sm:$0x1] %vm292_vm3, %v1642_v3 }
  0x2d   : > { %311 = vst.msk [vmem:[#allocation3 + $0x89] sm:$0x1] %vm292_vm3, %v1642_v3 }
  0x2e   : > { %312 = vst.msk [vmem:[#allocation3 + $0x99] sm:$0x1] %vm292_vm3, %v1642_v3 }
  0x97   : > { %v364_v10 = vpop.f32.mrf.mxu0  ;;  %v370_v11 = vpop.f32.mrf.mxu1 }
  0x98   : > { %v388_v12 = vmax.f32 %v364_v10, 0.0  ;;  %v390_v13 = vmax.f32 %v370_v11, 0.0 }
  0x9a   : > { %397 = vst.msk [vmem:[#allocation2] sm:$0xff] %vm396_vm4, %v388_v12 }
  0x9b   : > { %399 = vst.msk [vmem:[#allocation2 + $0x10] sm:$0xff] %vm396_vm4, %v390_v13  ;;  %v376_v14 = vpop.f32.mrf.mxu2  ;;  %v382_v15 = vpop.f32.mrf.mxu3 }
  0x9c   : > { %v392_v16 = vmax.f32 %v376_v14, 0.0  ;;  %v394_v17 = vmax.f32 %v382_v15, 0.0 }
  0x9e   : > { %401 = vst.msk [vmem:[#allocation2 + $0x20] sm:$0xff] %vm396_vm4, %v392_v16 }
  0x9f   : > { %403 = vst.msk [vmem:[#allocation2 + $0x30] sm:$0xff] %vm396_vm4, %v394_v17  ;;  %v367_v18 = vpop.f32.mrf.mxu0  ;;  %v373_v19 = vpop.f32.mrf.mxu1 }
  0xa0   : > { %v389_v20 = vmax.f32 %v367_v18, 0.0  ;;  %v391_v21 = vmax.f32 %v373_v19, 0.0 }
  0xa2   : > { %398 = vst.msk [vmem:[#allocation2 + $0x8] sm:$0xff] %vm396_vm4, %v389_v20 }
  0xa3   : > { %400 = vst.msk [vmem:[#allocation2 + $0x18] sm:$0xff] %vm396_vm4, %v391_v21  ;;  %v379_v22 = vpop.f32.mrf.mxu2  ;;  %v385_v23 = vpop.f32.mrf.mxu3 }
  0xa4   : > { %v393_v24 = vmax.f32 %v379_v22, 0.0  ;;  %v395_v25 = vmax.f32 %v385_v23, 0.0 }
  0xa6   : > { %402 = vst.msk [vmem:[#allocation2 + $0x28] sm:$0xff] %vm396_vm4, %v393_v24 }
  0xa7   : > { %404 = vst.msk [vmem:[#allocation2 + $0x38] sm:$0xff] %vm396_vm4, %v395_v25 }
  0xa8 PF: > { %s1442_s15 = sshll.u32 %s1624_s18, 2  ;;  %vm441_vm5 = vcmask 1043456   ;;  %v405_v26 = vld [vmem:[#allocation2] sm:$0xff]  ;;  %vm416_vm6 = vcmask 31744   ;;  %v411_v30 = vld [vmem:[#allocation2 + $0x30] sm:$0xff]  ;;  %s1643_s18 = smov 8  }
  0xa9   : > { %s414_s19 = scalar_lea.vmem %s2085_s3, %s1442_s15  ;;  %v406_v29 = vld [vmem:[#allocation2 + $0x8] sm:$0xff]  ;;  %v407_v31 = vld [vmem:[#allocation2 + $0x10] sm:$0xff]  ;;  %v409_v34 = vld [vmem:[#allocation2 + $0x20] sm:$0xff]  ;;  %vm495_vm7 = vcmask 64512   ;;  %vm566_vm8 = vcmask 97280   ;;  %vm536_vm9 = vcmask 97344  }
  0xaa   : > { %v415_v28 = vld [vmem:[%s414_s19] sm:$0xf]  ;;  %v408_v33 = vld [vmem:[#allocation2 + $0x18] sm:$0xff]  ;;  %v492_v38 = vld [vmem:[%s1715_s9 + $0x30] sm:$0xff] }
  0xab   : > { %1443 = vmatpush.msk.msra.mxu0 %vm441_vm5, %v415_v28  ;;  %1557 = vmatpush.msk.msra.mxu3 %vm441_vm5, %v415_v28  ;;  %502 = vst.msk [vmem:[#allocation3 + $0x71] sm:$0xff] %vm495_vm7, %v492_v38  ;;  %v487_v44 = vld [vmem:[%s1715_s9 + $0x8] sm:$0xff]  ;;  %v1453_v46 = vld [vmem:[%s2086_s4 + $0x18] sm:$0xf]  ;;  %v1452_v48 = vld [vmem:[%s2086_s4 + $0x10] sm:$0xff] }
  0xac   : > { %1444 = vmatmul.msk.f32.vlgmr.msra.gmra.mxu0 %vm416_vm6, %v405_v26  ;;  %497 = vst.msk [vmem:[#allocation3 + $0x21] sm:$0xff] %vm495_vm7, %v487_v44  ;;  %v491_v45 = vld [vmem:[%s1715_s9 + $0x28] sm:$0xff]  ;;  %1454 = vmatpush.msk.msra.mxu1 %vm441_vm5, %v1453_v46  ;;  %v1472_v49 = vld [vmem:[%s2086_s4 + $0x20] sm:$0xff]  ;;  %v1484_v53 = vld [vmem:[%s2086_s4 + $0x38] sm:$0xf] }
  0xad   : > { %v410_v27 = vld [vmem:[#allocation2 + $0x28] sm:$0xff]  ;;  %501 = vst.msk [vmem:[#allocation3 + $0x61] sm:$0xff] %vm495_vm7, %v491_v45  ;;  %v486_v50 = vld [vmem:[%s1715_s9] sm:$0xff]  ;;  %1558 = vmatpush.msk.msra.mxu2 %vm441_vm5, %v1453_v46  ;;  %v1483_v54 = vld [vmem:[%s2086_s4 + $0x30] sm:$0xff]  ;;  %1485 = vmatpush.msk.msrb.mxu0 %vm441_vm5, %v1484_v53 }
  0xae   : > { %1449 = vmatmul.msk.f32.vlgmr.msra.gmra.mxu3 %vm416_vm6, %v410_v27  ;;  %v412_v32 = vld [vmem:[#allocation2 + $0x38] sm:$0xff]  ;;  %v1473_v47 = vld [vmem:[%s2086_s4 + $0x28] sm:$0xf]  ;;  %496 = vst.msk [vmem:[#allocation3 + $0x11] sm:$0xff] %vm495_vm7, %v486_v50  ;;  %609 = vmatpush.msra.mxu1 %v1452_v48  ;;  %v490_v58 = vld [vmem:[%s1715_s9 + $0x20] sm:$0xff] }
  0xaf   : > { %1474 = vmatpush.msk.msrb.mxu3 %vm441_vm5, %v1473_v47  ;;  %1559 = vmatpush.msra.mxu2 %v1452_v48  ;;  %v555_v51 = vld [vmem:[#allocation3 + $0x1] sm:$0xff]  ;;  %v489_v56 = vld [vmem:[%s1715_s9 + $0x18] sm:$0xff]  ;;  %500 = vst.msk [vmem:[#allocation3 + $0x51] sm:$0xff] %vm495_vm7, %v490_v58  ;;  %v488_v60 = vld [vmem:[%s1715_s9 + $0x10] sm:$0xff] }
  0xb0   : > { %v703_v52 = vld [vmem:[#allocation3 + $0x2] sm:$0xff]  ;;  %1455 = vmatmul.msk.f32.vlgmr.msra.gmra.mxu1 %vm566_vm8, %v555_v51  ;;  %843 = vmatpush.msrb.mxu0 %v1483_v54  ;;  %499 = vst.msk [vmem:[#allocation3 + $0x41] sm:$0xff] %vm495_vm7, %v489_v56  ;;  %v1506_v11 = vld [vmem:[%s2086_s4 + $0x58] sm:$0xf]  ;;  %v1527_v27 = vld [vmem:[%s2086_s4 + $0x70] sm:$0xff] }
  0xb1   : > { %756 = vmatpush.msrb.mxu3 %v1472_v49  ;;  %v554_v59 = vld [vmem:[%s2086_s4 + $0x8] sm:$0xf]  ;;  %498 = vst.msk [vmem:[#allocation3 + $0x31] sm:$0xff] %vm495_vm7, %v488_v60  ;;  %v553_v0 = vld [vmem:[%s2086_s4] sm:$0xff]  ;;  %v1528_v15 = vld [vmem:[%s2086_s4 + $0x78] sm:$0xf] }
  0xb2   : > { %1463 = vmatpush.msk.msrb.mxu2 %vm441_vm5, %v554_v59  ;;  %v1495_v62 = vld [vmem:[%s2086_s4 + $0x48] sm:$0xf]  ;;  %v1494_v1 = vld [vmem:[%s2086_s4 + $0x40] sm:$0xff]  ;;  %v493_v17 = vld [vmem:[%s1715_s9 + $0x38] sm:$0xff]  ;;  %1529 = vmatpush.msk.msra.mxu0 %vm441_vm5, %v1528_v15 }
  0xb3   : > { %1496 = vmatpush.msk.msrb.mxu1 %vm441_vm5, %v1495_v62  ;;  %v1517_v12 = vld [vmem:[%s2086_s4 + $0x68] sm:$0xf]  ;;  %503 = vst.msk [vmem:[#allocation3 + $0x81] sm:$0xff] %vm495_vm7, %v493_v17  ;;  %v1516_v23 = vld [vmem:[%s2086_s4 + $0x60] sm:$0xff]  ;;  %v1233_v50 = vld [vmem:[#allocation3 + $0x92] sm:$0xff] }
  0xb4   : > { %1445 = vmatmul.msk.f32.gmra.mxu0 %vm416_vm6, %v406_v29  ;;  %677 = vmatpush.msrb.mxu2 %v553_v0  ;;  %v1539_v16 = vld [vmem:[%s2086_s4 + $0x88] sm:$0xf]  ;;  %v545_v28 = vld [vmem:[#allocation3] sm:$0xff] }
  0xb5   : > { %930 = vmatpush.msrb.mxu1 %v1494_v1  ;;  %1518 = vmatpush.msk.msra.mxu3 %vm441_vm5, %v1517_v12 }
  0xb6   : > { %1450 = vmatmul.msk.f32.gmra.mxu3 %vm416_vm6, %v411_v30  ;;  %1192 = vmatpush.msra.mxu0 %v1527_v27 }
  0xb7   : > { %1540 = vmatpush.msk.msra.mxu1 %vm441_vm5, %v1539_v16  ;;  %1105 = vmatpush.msra.mxu3 %v1516_v23 }
  0xbc   : > { %1446 = vmatmul.msk.f32.gmra.mxu0 %vm416_vm6, %v407_v31  ;;  %v1505_v31 = vld [vmem:[%s2086_s4 + $0x50] sm:$0xff] }
  0xbe   : > { %1451 = vmatmul.msk.f32.gmra.mxu3 %vm416_vm6, %v412_v32 }
  0xc4   : > { %1447 = vmatmul.msk.f32.gmra.mxu0 %vm416_vm6, %v408_v33 }
  0xc6   : > { %1475 = vmatmul.msk.f32.vlgmr.msrb.gmra.mxu3 %vm566_vm8, %v703_v52 }
  0xcc   : > { %1448 = vmatmul.msk.f32.gmra.mxu0 %vm416_vm6, %v409_v34  ;;  %v1538_v34 = vld [vmem:[%s2086_s4 + $0x80] sm:$0xff] }
  0xcd   : > { %1279 = vmatpush.msra.mxu1 %v1538_v34 }
 0x129   : > { %v462_v35 = vpop.f32.mrf.mxu0 }
 0x131   : > { %v477_v36 = vpop.f32.mrf.mxu3  ;;  %v465_v37 = vpop.f32.mrf.mxu0 }
 0x132   : > { %522 = vrot.lane.b32.xlu1 %v477_v36, %s1643_s18 }
 0x139   : > { %v480_v39 = vpop.f32.mrf.mxu3  ;;  %v468_v40 = vpop.f32.mrf.mxu0 }
 0x13a   : > { %524 = vrot.lane.b32.xlu2 %v480_v39, %s1643_s18  ;;  %512 = vrot.lane.b32.xlu1 %v462_v35, %s1643_s18  ;;  %v611_v39 = vpop.f32.mrf.mxu1 }
 0x141   : > { %v483_v41 = vpop.f32.mrf.mxu3  ;;  %v471_v42 = vpop.f32.mrf.mxu0 }
 0x142   : > { %514 = vrot.lane.b32.xlu2 %v465_v37, %s1643_s18  ;;  %526 = vrot.lane.b32.xlu1 %v483_v41, %s1643_s18 }
 0x143   : > { %518 = vrot.lane.b32.xlu0 %v471_v42, %s1643_s18  ;;  %v1146_v42 = vld [vmem:[#allocation3 + $0x91] sm:$0xff] }
 0x149   : > { %v474_v43 = vpop.f32.mrf.mxu0  ;;  %v758_v46 = vpop.f32.mrf.mxu3 }
 0x14b   : > { %520 = vrot.lane.b32.xlu0 %v474_v43, %s1643_s18 }
 0x153   : > { %516 = vrot.lane.b32.xlu0 %v468_v40, %s1643_s18  ;;  %v1059_v40 = vld [vmem:[#allocation3 + $0x90] sm:$0xff] }
 0x194   : > { %v525_v55 = vpop.permute.xlu2 %524 }
 0x195   : > { %543 = vst.msk [vmem:[#allocation3 + $0x71] sm:$0xff] %vm536_vm9, %v525_v55 }
 0x19c   : > { %v515_v57 = vpop.permute.xlu2 %514  ;;  %v562_v24 = vld [vmem:[#allocation3 + $0x71] sm:$0xff] }
 0x19d   : > { %538 = vst.msk [vmem:[#allocation3 + $0x21] sm:$0xff] %vm536_vm9, %v515_v57  ;;  %v710_v35 = vld [vmem:[#allocation3 + $0x72] sm:$0xff] }
 0x19e   : > { %v796_v36 = vld [vmem:[#allocation3 + $0x70] sm:$0xff] }
 0x1a4   : > { %v523_v61 = vpop.permute.xlu1 %522  ;;  %v1847_v6 = vld [vmem:[#allocation3 + $0x21] sm:$0xff] }
 0x1a5   : > { %542 = vst.msk [vmem:[#allocation3 + $0x61] sm:$0xff] %vm536_vm9, %v523_v61  ;;  %v1849_v7 = vld [vmem:[#allocation3 + $0x22] sm:$0xff] }
 0x1a6   : > { %v1855_v8 = vld [vmem:[#allocation3 + $0x20] sm:$0xff] }
 0x1ac   : > { %v513_v63 = vpop.permute.xlu1 %512  ;;  %v1888_v19 = vld [vmem:[#allocation3 + $0x61] sm:$0xff] }
 0x1ad   : > { %537 = vst.msk [vmem:[#allocation3 + $0x11] sm:$0xff] %vm536_vm9, %v513_v63  ;;  %v709_v32 = vld [vmem:[#allocation3 + $0x62] sm:$0xff] }
 0x1ae   : > { %v795_v33 = vld [vmem:[#allocation3 + $0x60] sm:$0xff] }
 0x1b4   : > { %v556_v2 = vld [vmem:[#allocation3 + $0x11] sm:$0xff]  ;;  %v527_v18 = vpop.permute.xlu1 %526 }
 0x1b5   : > { %v1840_v3 = vld [vmem:[#allocation3 + $0x12] sm:$0xff]  ;;  %1456 = vmatmul.msk.f32.gmra.mxu1 %vm566_vm8, %v556_v2  ;;  %v519_v5 = vpop.permute.xlu0 %518  ;;  %544 = vst.msk [vmem:[#allocation3 + $0x81] sm:$0xff] %vm536_vm9, %v527_v18 }
 0x1b6   : > { %v790_v4 = vld [vmem:[#allocation3 + $0x10] sm:$0xff]  ;;  %1476 = vmatmul.msk.f32.gmra.mxu3 %vm566_vm8, %v1840_v3  ;;  %540 = vst.msk [vmem:[#allocation3 + $0x41] sm:$0xff] %vm536_vm9, %v519_v5 }
 0x1b7   : > { %1486 = vmatmul.msk.f32.vlgmr.msrb.gmra.mxu0 %vm566_vm8, %v790_v4 }
 0x1bc   : > { %v797_v37 = vld [vmem:[#allocation3 + $0x80] sm:$0xff] }
 0x1bd   : > { %1457 = vmatmul.msk.f32.gmra.mxu1 %vm566_vm8, %v1847_v6  ;;  %v521_v9 = vpop.permute.xlu0 %520  ;;  %v1859_v10 = vld [vmem:[#allocation3 + $0x41] sm:$0xff] }
 0x1be   : > { %1477 = vmatmul.msk.f32.gmra.mxu3 %vm566_vm8, %v1849_v7  ;;  %541 = vst.msk [vmem:[#allocation3 + $0x51] sm:$0xff] %vm536_vm9, %v521_v9  ;;  %1459 = vmatmul.msk.f32.vlgmr.msra.gmra.mxu2 %vm566_vm8, %v1859_v10  ;;  %v1902_v25 = vld [vmem:[#allocation3 + $0x42] sm:$0xff] }
 0x1bf   : > { %1487 = vmatmul.msk.f32.gmra.mxu0 %vm566_vm8, %v1855_v8  ;;  %1507 = vmatpush.msk.msra.mxu2 %vm441_vm5, %v1506_v11  ;;  %v793_v26 = vld [vmem:[#allocation3 + $0x40] sm:$0xff] }
 0x1c0   : > { %v884_v38 = vld [vmem:[#allocation3 + $0x81] sm:$0xff] }
 0x1c1   : > { %1017 = vmatpush.msra.mxu2 %v1505_v31  ;;  %v1232_v45 = vld [vmem:[#allocation3 + $0x82] sm:$0xff] }
 0x1c5   : > { %v517_v13 = vpop.permute.xlu0 %516  ;;  %v1872_v14 = vld [vmem:[#allocation3 + $0x51] sm:$0xff] }
 0x1c6   : > { %539 = vst.msk [vmem:[#allocation3 + $0x31] sm:$0xff] %vm536_vm9, %v517_v13  ;;  %1460 = vmatmul.msk.f32.gmra.mxu2 %vm566_vm8, %v1872_v14  ;;  %v708_v29 = vld [vmem:[#allocation3 + $0x52] sm:$0xff] }
 0x1c7   : > { %v794_v30 = vld [vmem:[#allocation3 + $0x50] sm:$0xff] }
 0x1cd   : > { %v558_v20 = vld [vmem:[#allocation3 + $0x31] sm:$0xff] }
 0x1ce   : > { %v1890_v21 = vld [vmem:[#allocation3 + $0x32] sm:$0xff]  ;;  %1458 = vmatmul.msk.f32.gmra.mxu1 %vm566_vm8, %v558_v20  ;;  %1461 = vmatmul.msk.f32.gmra.mxu2 %vm566_vm8, %v1888_v19 }
 0x1cf   : > { %v792_v22 = vld [vmem:[#allocation3 + $0x30] sm:$0xff]  ;;  %1478 = vmatmul.msk.f32.gmra.mxu3 %vm566_vm8, %v1890_v21 }
 0x1d0   : > { %1488 = vmatmul.msk.f32.gmra.mxu0 %vm566_vm8, %v792_v22 }
 0x1d6   : > { %1462 = vmatmul.msk.f32.gmra.mxu2 %vm566_vm8, %v562_v24  ;;  %1497 = vmatmul.msk.f32.vlgmr.msrb.gmra.mxu1 %vm566_vm8, %v556_v2 }
 0x1d7   : > { %1479 = vmatmul.msk.f32.gmra.mxu3 %vm566_vm8, %v1902_v25 }
 0x1d8   : > { %1489 = vmatmul.msk.f32.gmra.mxu0 %vm566_vm8, %v793_v26 }
 0x1de   : > { %1464 = vmatmul.msk.f32.vlgmr.msrb.gmra.mxu2 %vm566_vm8, %v545_v28  ;;  %1498 = vmatmul.msk.f32.gmra.mxu1 %vm566_vm8, %v1847_v6 }
 0x1df   : > { %1480 = vmatmul.msk.f32.gmra.mxu3 %vm566_vm8, %v708_v29 }
 0x1e0   : > { %1490 = vmatmul.msk.f32.gmra.mxu0 %vm566_vm8, %v794_v30 }
 0x1e6   : > { %1465 = vmatmul.msk.f32.gmra.mxu2 %vm566_vm8, %v790_v4  ;;  %1499 = vmatmul.msk.f32.gmra.mxu1 %vm566_vm8, %v558_v20 }
 0x1e7   : > { %1481 = vmatmul.msk.f32.gmra.mxu3 %vm566_vm8, %v709_v32 }
 0x1e8   : > { %1491 = vmatmul.msk.f32.gmra.mxu0 %vm566_vm8, %v795_v33 }
 0x1ee   : > { %1466 = vmatmul.msk.f32.gmra.mxu2 %vm566_vm8, %v1855_v8  ;;  %1500 = vmatmul.msk.f32.gmra.mxu1 %vm566_vm8, %v1859_v10 }
 0x1ef   : > { %1482 = vmatmul.msk.f32.gmra.mxu3 %vm566_vm8, %v710_v35 }
 0x1f0   : > { %1492 = vmatmul.msk.f32.gmra.mxu0 %vm566_vm8, %v796_v36 }
 0x1f6   : > { %1467 = vmatmul.msk.f32.gmra.mxu2 %vm566_vm8, %v792_v22  ;;  %1501 = vmatmul.msk.f32.gmra.mxu1 %vm566_vm8, %v1872_v14 }
 0x1f7   : > { %1519 = vmatmul.msk.f32.vlgmr.msra.gmra.mxu3 %vm566_vm8, %v1855_v8 }
 0x1f8   : > { %1493 = vmatmul.msk.f32.gmra.mxu0 %vm566_vm8, %v797_v37 }
 0x1fe   : > { %1468 = vmatmul.msk.f32.gmra.mxu2 %vm566_vm8, %v793_v26  ;;  %1502 = vmatmul.msk.f32.gmra.mxu1 %vm566_vm8, %v1888_v19 }
 0x1ff   : > { %1520 = vmatmul.msk.f32.gmra.mxu3 %vm566_vm8, %v792_v22 }
 0x200   : > { %1530 = vmatmul.msk.f32.vlgmr.msra.gmra.mxu0 %vm566_vm8, %v1847_v6 }
 0x206   : > { %1469 = vmatmul.msk.f32.gmra.mxu2 %vm566_vm8, %v794_v30  ;;  %1503 = vmatmul.msk.f32.gmra.mxu1 %vm566_vm8, %v562_v24 }
 0x207   : > { %1521 = vmatmul.msk.f32.gmra.mxu3 %vm566_vm8, %v793_v26 }
 0x208   : > { %1531 = vmatmul.msk.f32.gmra.mxu0 %vm566_vm8, %v558_v20 }
 0x20e   : > { %1470 = vmatmul.msk.f32.gmra.mxu2 %vm566_vm8, %v795_v33  ;;  %1504 = vmatmul.msk.f32.gmra.mxu1 %vm566_vm8, %v884_v38 }
 0x20f   : > { %1522 = vmatmul.msk.f32.gmra.mxu3 %vm566_vm8, %v794_v30 }
 0x210   : > { %1532 = vmatmul.msk.f32.gmra.mxu0 %vm566_vm8, %v1859_v10 }
 0x216   : > { %1471 = vmatmul.msk.f32.gmra.mxu2 %vm566_vm8, %v796_v36  ;;  %1541 = vmatmul.msk.f32.vlgmr.msra.gmra.mxu1 %vm566_vm8, %v1849_v7 }
 0x217   : > { %1523 = vmatmul.msk.f32.gmra.mxu3 %vm566_vm8, %v795_v33 }
 0x218   : > { %1533 = vmatmul.msk.f32.gmra.mxu0 %vm566_vm8, %v1872_v14 }
 0x21e   : > { %1508 = vmatmul.msk.f32.vlgmr.msra.gmra.mxu2 %vm566_vm8, %v1840_v3  ;;  %1542 = vmatmul.msk.f32.gmra.mxu1 %vm566_vm8, %v1890_v21 }
 0x21f   : > { %1524 = vmatmul.msk.f32.gmra.mxu3 %vm566_vm8, %v796_v36 }
 0x220   : > { %1534 = vmatmul.msk.f32.gmra.mxu0 %vm566_vm8, %v1888_v19 }
 0x226   : > { %1509 = vmatmul.msk.f32.gmra.mxu2 %vm566_vm8, %v1849_v7  ;;  %1543 = vmatmul.msk.f32.gmra.mxu1 %vm566_vm8, %v1902_v25 }
 0x227   : > { %1525 = vmatmul.msk.f32.gmra.mxu3 %vm566_vm8, %v797_v37 }
 0x228   : > { %1535 = vmatmul.msk.f32.gmra.mxu0 %vm566_vm8, %v562_v24 }
 0x22e   : > { %1510 = vmatmul.msk.f32.gmra.mxu2 %vm566_vm8, %v1890_v21  ;;  %1544 = vmatmul.msk.f32.gmra.mxu1 %vm566_vm8, %v708_v29 }
 0x22f   : > { %1526 = vmatmul.msk.f32.gmra.mxu3 %vm566_vm8, %v1059_v40 }
 0x230   : > { %1536 = vmatmul.msk.f32.gmra.mxu0 %vm566_vm8, %v884_v38 }
 0x232   : > { %v614_v41 = vpop.f32.mrf.mxu1 }
 0x234   : > { %v845_v47 = vpop.f32.mrf.mxu0 }
 0x236   : > { %1511 = vmatmul.msk.f32.gmra.mxu2 %vm566_vm8, %v1902_v25  ;;  %1545 = vmatmul.msk.f32.gmra.mxu1 %vm566_vm8, %v709_v32 }
 0x238   : > { %1537 = vmatmul.msk.f32.gmra.mxu0 %vm566_vm8, %v1146_v42 }
 0x239   : > { %v761_v51 = vpop.f32.mrf.mxu3 }
 0x23a   : > { %v617_v44 = vpop.f32.mrf.mxu1 }
 0x23c   : > { %v848_v53 = vpop.f32.mrf.mxu0 }
 0x23e   : > { %1512 = vmatmul.msk.f32.gmra.mxu2 %vm566_vm8, %v708_v29  ;;  %1546 = vmatmul.msk.f32.gmra.mxu1 %vm566_vm8, %v710_v35 }
 0x241   : > { %v1983_v43 = vpop.f32.mrf.mxu2  ;;  %v764_v56 = vpop.f32.mrf.mxu3 }
 0x246   : > { %1513 = vmatmul.msk.f32.gmra.mxu2 %vm566_vm8, %v709_v32  ;;  %1547 = vmatmul.msk.f32.gmra.mxu1 %vm566_vm8, %v1232_v45 }
 0x249   : > { %v1987_v48 = vpop.f32.mrf.mxu2 }
 0x24b   : > { %v1989_v49 = vpop.f32.mrf.mxu1 }
 0x24d   : > { %v851_v57 = vpop.f32.mrf.mxu0 }
 0x24e   : > { %1514 = vmatmul.msk.f32.gmra.mxu2 %vm566_vm8, %v710_v35  ;;  %1548 = vmatmul.msk.f32.gmra.mxu1 %vm566_vm8, %v1233_v50 }
 0x251   : > { %v1993_v52 = vpop.f32.mrf.mxu2 }
 0x252   : > { %v767_v60 = vpop.f32.mrf.mxu3 }
 0x253   : > { %v932_v54 = vpop.f32.mrf.mxu1 }
 0x255   : > { %v1998_v62 = vpop.f32.mrf.mxu0 }
 0x256   : > { %1515 = vmatmul.msk.f32.gmra.mxu2 %vm566_vm8, %v1232_v45 }
 0x259   : > { %v1996_v55 = vpop.f32.mrf.mxu2 }
 0x25a   : > { %v2002_v1 = vpop.f32.mrf.mxu3 }
 0x25b   : > { %v935_v58 = vpop.f32.mrf.mxu1 }
 0x25d   : > { %v2004_v2 = vpop.f32.mrf.mxu0 }
 0x261   : > { %v679_v59 = vpop.f32.mrf.mxu2 }
 0x262   : > { %v2008_v5 = vpop.f32.mrf.mxu3  ;;  %v680_v18 = vadd.f32 %v679_v59, %v611_v39 }
 0x263   : > { %v938_v61 = vpop.f32.mrf.mxu1 }
 0x264   : > { %v782_v21 = vadd.f32 %v758_v46, %v680_v18 }
 0x265   : > { %v2010_v6 = vpop.f32.mrf.mxu0 }
 0x266   : > { %v869_v25 = vadd.f32 %v845_v47, %v782_v21 }
 0x268   : > { %v956_v28 = vadd.f32 %v932_v54, %v869_v25 }
 0x269   : > { %v682_v63 = vpop.f32.mrf.mxu2 }
 0x26a   : > { %v2014_v9 = vpop.f32.mrf.mxu3  ;;  %v683_v24 = vadd.f32 %v682_v63, %v614_v41 }
 0x26b   : > { %v2000_v0 = vpop.f32.mrf.mxu1 }
 0x26c   : > { %v783_v27 = vadd.f32 %v761_v51, %v683_v24 }
 0x26d   : > { %v2016_v11 = vpop.f32.mrf.mxu0 }
 0x26e   : > { %v870_v35 = vadd.f32 %v848_v53, %v783_v27 }
 0x270   : > { %v957_v39 = vadd.f32 %v935_v58, %v870_v35 }
 0x271   : > { %v685_v3 = vpop.f32.mrf.mxu2 }
 0x272   : > { %v2020_v14 = vpop.f32.mrf.mxu3  ;;  %v686_v33 = vadd.f32 %v685_v3, %v617_v44 }
 0x273   : > { %v2006_v4 = vpop.f32.mrf.mxu1 }
 0x274   : > { %v784_v37 = vadd.f32 %v764_v56, %v686_v33 }
 0x275   : > { %v2022_v15 = vpop.f32.mrf.mxu0 }
 0x276   : > { %v871_v51 = vadd.f32 %v851_v57, %v784_v37 }
 0x278   : > { %v958_v63 = vadd.f32 %v938_v61, %v871_v51 }
 0x279   : > { %v688_v7 = vpop.f32.mrf.mxu2 }
 0x27a   : > { %v1107_v19 = vpop.f32.mrf.mxu3  ;;  %v689_v47 = vadd.f32 %v688_v7, %v1989_v49 }
 0x27b   : > { %v2012_v8 = vpop.f32.mrf.mxu1 }
 0x27c   : > { %v785_v59 = vadd.f32 %v767_v60, %v689_v47 }
 0x27d   : > { %v1194_v20 = vpop.f32.mrf.mxu0 }
 0x27e   : > { %v872_v49 = vadd.f32 %v1998_v62, %v785_v59 }
 0x280   : > { %v959_v61 = vadd.f32 %v2000_v0, %v872_v49 }
 0x281   : > { %v691_v10 = vpop.f32.mrf.mxu2 }
 0x282   : > { %v1110_v26 = vpop.f32.mrf.mxu3 }
 0x283   : > { %v2018_v12 = vpop.f32.mrf.mxu1 }
 0x285   : > { %v1197_v29 = vpop.f32.mrf.mxu0 }
 0x289   : > { %v694_v13 = vpop.f32.mrf.mxu2 }
 0x28a   : > { %v1113_v40 = vpop.f32.mrf.mxu3  ;;  %v695_v27 = vadd.f32 %v694_v13, %v1987_v48 }
 0x28b   : > { %v2024_v16 = vpop.f32.mrf.mxu1 }
 0x28d   : > { %v1200_v46 = vpop.f32.mrf.mxu0 }
 0x291   : > { %v2026_v17 = vpop.f32.mrf.mxu2 }
 0x292   : > { %v1116_v18 = vpop.f32.mrf.mxu3  ;;  %v698_v48 = vadd.f32 %v2026_v17, %v1993_v52 }
 0x293   : > { %v1281_v22 = vpop.f32.mrf.mxu1 }
 0x295   : > { %v1203_v7 = vpop.f32.mrf.mxu0 }
 0x299   : > { %v2028_v23 = vpop.f32.mrf.mxu2 }
 0x29a   : > { %v1119_v62 = vpop.f32.mrf.mxu3  ;;  %v701_v52 = vadd.f32 %v2028_v23, %v1996_v55 }
 0x29b   : > { %v1284_v32 = vpop.f32.mrf.mxu1 }
 0x2a1   : > { %v1019_v30 = vpop.f32.mrf.mxu2 }
 0x2a2   : > { %v1043_v31 = vadd.f32 %v1019_v30, %v956_v28  ;;  %v787_v30 = vadd.f32 %v2008_v5, %v695_v27  ;;  %v788_v5 = vadd.f32 %v2014_v9, %v698_v48  ;;  %v789_v9 = vadd.f32 %v2020_v14, %v701_v52 }
 0x2a3   : > { %v1287_v54 = vpop.f32.mrf.mxu1 }
 0x2a4   : > { %v1131_v34 = vadd.f32 %v1107_v19, %v1043_v31  ;;  %v692_v19 = vadd.f32 %v691_v10, %v1983_v43  ;;  %v876_v23 = vadd.f32 %v2022_v15, %v789_v9 }
 0x2a6   : > { %v1218_v36 = vadd.f32 %v1194_v20, %v1131_v34  ;;  %v963_v14 = vadd.f32 %v2024_v16, %v876_v23 }
 0x2a8   : > { %v1305_v38 = vadd.f32 %v1281_v22, %v1218_v36  ;;  %v786_v22 = vadd.f32 %v2002_v1, %v692_v19  ;;  %v1122_v36 = vpop.f32.mrf.mxu3 }
 0x2a9   : > { %v1022_v42 = vpop.f32.mrf.mxu2 }
 0x2aa   : > { %v1313_v45 = vmax.f32 %v1305_v38, 0.0  ;;  %v1044_v41 = vadd.f32 %v1022_v42, %v957_v39  ;;  %v873_v10 = vadd.f32 %v2004_v2, %v786_v22  ;;  %v874_v2 = vadd.f32 %v2010_v6, %v787_v30 }
 0x2ab   : > { %v1290_v57 = vpop.f32.mrf.mxu1  ;;  %v875_v6 = vadd.f32 %v2016_v11, %v788_v5 }
 0x2ac   : > { %1321 = vst.msk [vmem:[%s1720_s12] sm:$0xff] %vm416_vm6, %v1313_v45  ;;  %v1132_v50 = vadd.f32 %v1110_v26, %v1044_v41  ;;  %v960_v31 = vadd.f32 %v2006_v4, %v873_v10  ;;  %v961_v4 = vadd.f32 %v2012_v8, %v874_v2 }
 0x2ad   : > { %v962_v8 = vadd.f32 %v2018_v12, %v875_v6 }
 0x2ae   : > { %v1219_v44 = vadd.f32 %v1197_v29, %v1132_v50  ;;  %v1206_v29 = vpop.f32.mrf.mxu0 }
 0x2b0   : > { %v1306_v53 = vadd.f32 %v1284_v32, %v1219_v44  ;;  %v1125_v47 = vpop.f32.mrf.mxu3 }
 0x2b1   : > { %v1025_v56 = vpop.f32.mrf.mxu2 }
 0x2b2   : > { %v1314_v3 = vmax.f32 %v1306_v53, 0.0  ;;  %v1045_v58 = vadd.f32 %v1025_v56, %v958_v63 }
 0x2b3   : > { %v1293_v0 = vpop.f32.mrf.mxu1 }
 0x2b4   : > { %1322 = vst.msk [vmem:[%s1720_s12 + $0x8] sm:$0xff] %vm416_vm6, %v1314_v3  ;;  %v1133_v20 = vadd.f32 %v1113_v40, %v1045_v58 }
 0x2b6   : > { %v1220_v21 = vadd.f32 %v1200_v46, %v1133_v20  ;;  %v1209_v38 = vpop.f32.mrf.mxu0 }
 0x2b8   : > { %v1307_v60 = vadd.f32 %v1287_v54, %v1220_v21  ;;  %v1128_v56 = vpop.f32.mrf.mxu3 }
 0x2b9   : > { %v1028_v24 = vpop.f32.mrf.mxu2 }
 0x2ba   : > { %v1315_v25 = vmax.f32 %v1307_v60, 0.0  ;;  %v1046_v26 = vadd.f32 %v1028_v24, %v959_v61 }
 0x2bb   : > { %v1296_v45 = vpop.f32.mrf.mxu1 }
 0x2bc   : > { %1323 = vst.msk [vmem:[%s1720_s12 + $0x10] sm:$0xff] %vm416_vm6, %v1315_v25  ;;  %v1134_v43 = vadd.f32 %v1116_v18, %v1046_v26 }
 0x2be   : > { %v1221_v28 = vadd.f32 %v1203_v7, %v1134_v43  ;;  %v1212_v44 = vpop.f32.mrf.mxu0 }
 0x2c0   : > { %v1308_v1 = vadd.f32 %v1290_v57, %v1221_v28 }
 0x2c1   : > { %v1031_v32 = vpop.f32.mrf.mxu2 }
 0x2c2   : > { %v1316_v33 = vmax.f32 %v1308_v1, 0.0  ;;  %v1047_v34 = vadd.f32 %v1031_v32, %v960_v31 }
 0x2c3   : > { %v1299_v59 = vpop.f32.mrf.mxu1 }
 0x2c4   : > { %1324 = vst.msk [vmem:[%s1720_s12 + $0x18] sm:$0xff] %vm416_vm6, %v1316_v33  ;;  %v1135_v13 = vadd.f32 %v1119_v62, %v1047_v34 }
 0x2c6   : > { %v1222_v35 = vadd.f32 %v1206_v29, %v1135_v13  ;;  %v1215_v58 = vpop.f32.mrf.mxu0 }
 0x2c8   : > { %v1309_v37 = vadd.f32 %v1293_v0, %v1222_v35 }
 0x2c9   : > { %v1034_v39 = vpop.f32.mrf.mxu2 }
 0x2ca   : > { %v1317_v40 = vmax.f32 %v1309_v37, 0.0  ;;  %v1048_v42 = vadd.f32 %v1034_v39, %v961_v4 }
 0x2cb   : > { %v1302_v19 = vpop.f32.mrf.mxu1 }
 0x2cc   : > { %1325 = vst.msk [vmem:[%s1720_s12 + $0x20] sm:$0xff] %vm416_vm6, %v1317_v40  ;;  %v1136_v17 = vadd.f32 %v1122_v36, %v1048_v42 }
 0x2ce   : > { %v1223_v41 = vadd.f32 %v1209_v38, %v1136_v17 }
 0x2d0   : > { %v1310_v46 = vadd.f32 %v1296_v45, %v1223_v41 }
 0x2d1   : > { %v1037_v50 = vpop.f32.mrf.mxu2 }
 0x2d2   : > { %v1318_v51 = vmax.f32 %v1310_v46, 0.0  ;;  %v1049_v54 = vadd.f32 %v1037_v50, %v962_v8 }
 0x2d4   : > { %1326 = vst.msk [vmem:[%s1720_s12 + $0x28] sm:$0xff] %vm416_vm6, %v1318_v51  ;;  %v1137_v55 = vadd.f32 %v1125_v47, %v1049_v54 }
 0x2d6   : > { %v1224_v11 = vadd.f32 %v1212_v44, %v1137_v55 }
 0x2d8   : > { %v1311_v53 = vadd.f32 %v1299_v59, %v1224_v11 }
 0x2d9   : > { %v1040_v63 = vpop.f32.mrf.mxu2 }
 0x2da   : > { %v1319_v12 = vmax.f32 %v1311_v53, 0.0  ;;  %v1050_v3 = vadd.f32 %v1040_v63, %v963_v14 }
 0x2dc   : > { %1327 = vst.msk [vmem:[%s1720_s12 + $0x30] sm:$0xff] %vm416_vm6, %v1319_v12  ;;  %v1138_v18 = vadd.f32 %v1128_v56, %v1050_v3 }
 0x2de   : > { %v1225_v20 = vadd.f32 %v1215_v58, %v1138_v18 }
 0x2e0   : > { %v1312_v49 = vadd.f32 %v1302_v19, %v1225_v20 }
 0x2e2   : > { %v1320_v7 = vmax.f32 %v1312_v49, 0.0 }
 0x2e4   : > { %1328 = vst.msk [vmem:[%s1720_s12 + $0x38] sm:$0xff] %vm416_vm6, %v1320_v7 }
 0x2e5 PF: > { %s15_s22 = sadd.s32 1, %s1640_s22   ;;  %s2088_s18 = smov %s1632_s20 }
 0x2e6   : > { %p12_p8 = scmp.ge.s32.totalorder %s15_s22, 10   ;;  %s2089_s19 = smov %s1636_s21 }
 0x2e7   : > { %s2090_s20 = smov %s2093_s23  ;;  %s2091_s21 = smov %s2097_s24 }
 0x2e8   :  { %14 = sbr.rel (!%p12_p8) target bundleno = 3 (0x3), region = 89 }

</bundles_post_ra>
